<compile_context>
chip_gen: v5e
topology: v5e:2x2
jax: 0.10.0
libtpu: 0.0.40
codegen_flags: <defaults>
</compile_context>

<pallas_src>
import math
from functools import partial

import jax
import jax.numpy as jnp
from jax import lax
from jax.experimental import pallas as pl
from jax.experimental.pallas import tpu as pltpu

LANES = 128


def _round_up(x, m):
    return (x + m - 1) // m * m


def _vmem_capacity_bytes():
    try:
        return int(pltpu.get_tpu_info().vmem_capacity_bytes)
    except Exception:
        return 64 << 20   # conservative default (v7x per-TensorCore VMEM)


# ---------------------------------------------------------------------------
# Fused multi-layer kernel: whole graph + all layer params resident in VMEM.
# ---------------------------------------------------------------------------
def gcn_fused_kernel(*refs, num_layers, out_valid):
    a_ref, x_ref = refs[0], refs[1]
    w_refs = refs[2:2 + num_layers]
    b_refs = refs[2 + num_layers:2 + 2 * num_layers]
    o_ref = refs[2 + 2 * num_layers]

    a = a_ref[...]                       # (N, N) bf16 normalized adjacency
    h = x_ref[...]                       # (N, fin_pad0) bf16 hidden state
    # TODO(synk): switch to lax.fori_loop over stacked params if num_layers grows.
    for li in range(num_layers):         # static unroll (num_layers is small)
        w = w_refs[li][...]              # (fin_pad, fout_pad) bf16
        b = b_refs[li][...]              # (1, fout_pad)       f32
        # Feature transform (bf16 x bf16, f32 accumulate on the MXU).
        xw = jnp.dot(h, w, preferred_element_type=jnp.float32)
        # Neighbor aggregation (bf16 operands, f32 accumulation) + f32 bias.
        hf = jnp.dot(a, xw.astype(jnp.bfloat16),
                     preferred_element_type=jnp.float32) + b
        if li < num_layers - 1:
            # Fused ReLU (dropout is identity at inference); bf16 for next MXU pass.
            h = jnp.maximum(hf, 0.0).astype(jnp.bfloat16)
        else:
            # Mask padded logit columns; stable log_softmax in f32.
            col = lax.broadcasted_iota(jnp.int32, hf.shape, 1)
            hf = jnp.where(col < out_valid, hf, -1e30)
            m = jnp.max(hf, axis=-1, keepdims=True)
            s = hf - m
            lse = jnp.log(jnp.sum(jnp.exp(s), axis=-1, keepdims=True))
            o_ref[...] = (s - lse).astype(o_ref.dtype)


def gcn_forward_fused(a_norm, nfeat, weights, biases, dropout_p=0.5):
    """Single pallas_call for the whole GCN stack (A_hat must fit VMEM)."""
    del dropout_p  # identity at inference
    n = nfeat.shape[0]
    num_layers = len(weights)
    dims = [weights[0].shape[0]] + [w.shape[1] for w in weights]
    pads = [_round_up(d, LANES) for d in dims]
    out_channels = dims[-1]

    # Zero-pad features / per-layer params to their own 128-lane widths (bf16).
    x_pad = jnp.zeros((n, pads[0]), jnp.bfloat16).at[:, :dims[0]].set(
        nfeat.astype(jnp.bfloat16))
    w_pads, b_pads = [], []
    for li, (w, b) in enumerate(zip(weights, biases)):
        wp = jnp.zeros((pads[li], pads[li + 1]), jnp.bfloat16)
        wp = wp.at[:w.shape[0], :w.shape[1]].set(w.astype(jnp.bfloat16))
        bp = jnp.zeros((1, pads[li + 1]), jnp.float32)
        bp = bp.at[:, :b.shape[-1]].set(b.reshape(1, -1))
        w_pads.append(wp)
        b_pads.append(bp)
    a_bf16 = a_norm.astype(jnp.bfloat16)

    flops = sum(2 * n * pads[li] * pads[li + 1] + 2 * n * n * pads[li + 1]
                for li in range(num_layers))
    bytes_accessed = (a_bf16.size * 2 + x_pad.size * 2
                      + sum(w.size * 2 for w in w_pads)
                      + sum(b.size * 4 for b in b_pads)
                      + n * pads[-1] * 4)
    # Everything (A, X, per-layer W/b, intermediates, output) is VMEM-resident.
    resident = bytes_accessed + 3 * n * max(pads) * 4
    vmem_limit = int(min(_vmem_capacity_bytes(),
                         max(resident + (8 << 20), 32 << 20)))

    kernel = partial(gcn_fused_kernel, num_layers=num_layers,
                     out_valid=out_channels)
    out_pad = pl.pallas_call(
        kernel,
        out_shape=jax.ShapeDtypeStruct((n, pads[-1]), jnp.float32),
        in_specs=[pl.BlockSpec(memory_space=pltpu.MemorySpace.VMEM)]
                 * (2 + 2 * num_layers),
        out_specs=pl.BlockSpec(memory_space=pltpu.MemorySpace.VMEM),
        compiler_params=pltpu.CompilerParams(vmem_limit_bytes=vmem_limit),
        cost_estimate=pl.CostEstimate(flops=flops, transcendentals=n * pads[-1],
                                      bytes_accessed=bytes_accessed),
    )(a_bf16, x_pad, *w_pads, *b_pads)
    return out_pad[:, :out_channels]


# ---------------------------------------------------------------------------
# Tiled path:
#   1) feat_transform:  XW_l = bf16(H_l) @ bf16(W_l)   (once per layer)
#   2) gcn_aggregate:   O    = A_hat @ XW_l  (+ bias / ReLU / log_softmax)
# ---------------------------------------------------------------------------
def feat_transform_kernel(x_ref, w_ref, o_ref):
    o_ref[...] = jnp.dot(x_ref[...].astype(jnp.bfloat16), w_ref[...],
                         preferred_element_type=jnp.float32).astype(o_ref.dtype)


def feat_transform(x_f32, w_bf16, *, tile_m):
    np_, fin = x_f32.shape
    fout = w_bf16.shape[1]
    vmem_need = 2 * tile_m * fin * 4 + fin * fout * 2 + 2 * tile_m * fout * 2
    vmem_limit = int(min(_vmem_capacity_bytes(),
                         max(vmem_need + (4 << 20), 32 << 20)))
    return pl.pallas_call(
        feat_transform_kernel,
        out_shape=jax.ShapeDtypeStruct((np_, fout), jnp.bfloat16),
        grid_spec=pltpu.PrefetchScalarGridSpec(
            num_scalar_prefetch=0,
            grid=(np_ // tile_m,),
            in_specs=[pl.BlockSpec((tile_m, fin), lambda i: (i, 0)),
                      pl.BlockSpec((fin, fout), lambda i: (0, 0))],   # W resident
            out_specs=pl.BlockSpec((tile_m, fout), lambda i: (i, 0)),
        ),
        compiler_params=pltpu.CompilerParams(
            dimension_semantics=("parallel",),
            vmem_limit_bytes=vmem_limit),
        cost_estimate=pl.CostEstimate(
            flops=2 * np_ * fin * fout, transcendentals=0,
            bytes_accessed=x_f32.size * 4 + w_bf16.size * 2 + np_ * fout * 2),
    )(x_f32, w_bf16)


def gcn_aggregate_kernel(a_ref, xw_ref, b_ref, o_ref, *, apply_relu,
                         apply_log_softmax, out_valid):
    k = pl.program_id(1)

    @pl.when(k == 0)
    def _():
        o_ref[...] = jnp.zeros_like(o_ref)

    # Accumulate straight into the resident output block ((i, 0) for every k).
    o_ref[...] += jnp.dot(a_ref[...], xw_ref[...],
                          preferred_element_type=jnp.float32)

    @pl.when(k == pl.num_programs(1) - 1)
    def _():
        h = o_ref[...] + b_ref[...]
        if apply_relu:
            h = jnp.maximum(h, 0.0)
        if apply_log_softmax:
            col = lax.broadcasted_iota(jnp.int32, h.shape, 1)
            h = jnp.where(col < out_valid, h, -1e30)
            m = jnp.max(h, axis=-1, keepdims=True)
            s = h - m
            lse = jnp.log(jnp.sum(jnp.exp(s), axis=-1, keepdims=True))
            h = s - lse
        o_ref[...] = h.astype(o_ref.dtype)


def gcn_aggregate(a_bf16, xw_bf16, b_f32, *, tile_m, tile_k, apply_relu,
                  apply_log_softmax, out_valid):
    np_ = a_bf16.shape[0]
    fout = xw_bf16.shape[1]
    grid = (np_ // tile_m, np_ // tile_k)
    vmem_need = (2 * tile_m * tile_k * 2 + 2 * tile_k * fout * 2
                 + 2 * tile_m * fout * 4 + 2 * fout * 4)
    vmem_limit = int(min(_vmem_capacity_bytes(),
                         max(vmem_need + (4 << 20), 32 << 20)))
    kernel = partial(gcn_aggregate_kernel, apply_relu=apply_relu,
                     apply_log_softmax=apply_log_softmax, out_valid=out_valid)
    return pl.pallas_call(
        kernel,
        out_shape=jax.ShapeDtypeStruct((np_, fout), jnp.float32),
        grid_spec=pltpu.PrefetchScalarGridSpec(
            num_scalar_prefetch=0,
            grid=grid,
            in_specs=[
                # TODO(synk): add pipeline_mode=pl.Buffered(3) on the A stream
                # if an xprof trace still shows exposed DMA at these tiles.
                pl.BlockSpec((tile_m, tile_k), lambda i, k: (i, k)),   # A tile
                pl.BlockSpec((tile_k, fout), lambda i, k: (k, 0)),     # XW k-slab
                pl.BlockSpec((1, fout), lambda i, k: (0, 0)),          # bias
            ],
            out_specs=pl.BlockSpec((tile_m, fout), lambda i, k: (i, 0)),
        ),
        compiler_params=pltpu.CompilerParams(
            dimension_semantics=("parallel", "arbitrary"),
            vmem_limit_bytes=vmem_limit),
        cost_estimate=pl.CostEstimate(
            flops=2 * np_ * np_ * fout,
            transcendentals=np_ * fout if apply_log_softmax else 0,
            bytes_accessed=(a_bf16.size * 2
                            + (np_ // tile_m) * xw_bf16.size * 2
                            + np_ * fout * 4)),
    )(a_bf16, xw_bf16, b_f32)


def gcn_forward_tiled(a_norm, nfeat, weights, biases, dropout_p=0.5,
                      *, tile_m=512, tile_k=512):
    """Per-layer streaming path for graphs whose dense A_hat exceeds VMEM."""
    del dropout_p  # identity at inference
    n = nfeat.shape[0]
    num_layers = len(weights)
    dims = [weights[0].shape[0]] + [w.shape[1] for w in weights]
    pads = [_round_up(d, LANES) for d in dims]
    out_channels = dims[-1]

    # Round N to lcm(tile_m, tile_k) so both grid axes divide exactly.
    np_ = _round_up(n, math.lcm(tile_m, tile_k))
    assert np_ % tile_m == 0 and np_ % tile_k == 0

    # Pad / cast A directly in bf16 (no padded f32 copy of the biggest array).
    a_bf16 = jnp.zeros((np_, np_), jnp.bfloat16).at[:n, :n].set(
        a_norm.astype(jnp.bfloat16))
    h = jnp.zeros((np_, pads[0]), jnp.float32).at[:n, :dims[0]].set(nfeat)

    for li in range(num_layers):
        w, b = weights[li], biases[li]
        w_l = jnp.zeros((pads[li], pads[li + 1]), jnp.bfloat16).at[
            :w.shape[0], :w.shape[1]].set(w.astype(jnp.bfloat16))
        b_l = jnp.zeros((1, pads[li + 1]), jnp.float32).at[:, :b.shape[-1]].set(
            b.reshape(1, -1))
        last = li == num_layers - 1
        xw = feat_transform(h, w_l, tile_m=tile_m)          # once per layer
        h = gcn_aggregate(a_bf16, xw, b_l, tile_m=tile_m, tile_k=tile_k,
                          apply_relu=not last, apply_log_softmax=last,
                          out_valid=out_channels)
    return h[:n, :out_channels]


def gcn_forward(a_norm, nfeat, weights, biases, dropout_p=0.5):
    """Dispatch fused vs tiled from the actual per-core VMEM capacity."""
    n = nfeat.shape[0]
    dims = [weights[0].shape[0]] + [w.shape[1] for w in weights]
    pads = [_round_up(d, LANES) for d in dims]
    fused_bytes = (n * n * 2 + n * pads[0] * 2 + n * pads[-1] * 4
                   + sum(pads[i] * pads[i + 1] * 2 for i in range(len(weights)))
                   + 3 * n * max(pads) * 4)
    # Conservative 40% budget: on v7x (64 MiB/TC, 2 TCs) this routes all but
    # small graphs to the tiled path, whose "parallel" row axis can shard
    # across both TensorCores.
    if fused_bytes < 0.4 * _vmem_capacity_bytes():
        return gcn_forward_fused(a_norm, nfeat, weights, biases, dropout_p)
    return gcn_forward_tiled(a_norm, nfeat, weights, biases, dropout_p)


# ---------------------------------------------------------------------------
# Pure-JAX reference (same bf16 casts) and graph construction helpers.
# ---------------------------------------------------------------------------
def gcn_reference(a_norm, nfeat, weights, biases):
    a = a_norm.astype(jnp.bfloat16)
    h = nfeat
    num_layers = len(weights)
    for li in range(num_layers):
        xw = jnp.dot(h.astype(jnp.bfloat16), weights[li].astype(jnp.bfloat16),
                     preferred_element_type=jnp.float32)
        h = jnp.dot(a, xw.astype(jnp.bfloat16),
                    preferred_element_type=jnp.float32) + biases[li].reshape(1, -1)
        if li < num_layers - 1:
            h = jnp.maximum(h, 0.0)
    return jax.nn.log_softmax(h, axis=-1)


def build_normalized_adjacency(key, n_nodes):
    """Dense symmetric adjacency with self-loops, D^-1/2 (A+I) D^-1/2."""
    a = jax.random.bernoulli(key, p=0.15, shape=(n_nodes, n_nodes)).astype(jnp.float32)
    a = jnp.maximum(a, a.T)
    a = a.at[jnp.arange(n_nodes), jnp.arange(n_nodes)].set(1.0)
    deg = jnp.sum(a, axis=-1)
    d_inv_sqrt = 1.0 / jnp.sqrt(deg)
    return a * d_inv_sqrt[:, None] * d_inv_sqrt[None, :]


if __name__ == "__main__":
    # Small, forward-consistent shapes.
    N = 32
    in_channels, hidden_channels, out_channels = 16, 32, 8
    num_layers = 3
    dropout = 0.5  # identity at inference

    key = jax.random.PRNGKey(0)
    k_graph, k_feat, *k_params = jax.random.split(key, 2 + 2 * num_layers)

    a_norm = build_normalized_adjacency(k_graph, N)
    nfeat = jax.random.normal(k_feat, (N, in_channels), dtype=jnp.float32)

    dims = [in_channels] + [hidden_channels] * (num_layers - 1) + [out_channels]
    weights, biases = [], []
    for li in range(num_layers):
        fan_in, fan_out = dims[li], dims[li + 1]
        limit = jnp.sqrt(6.0 / (fan_in + fan_out))
        w = jax.random.uniform(k_params[2 * li], (fan_in, fan_out),
                               minval=-limit, maxval=limit, dtype=jnp.float32)
        b = jnp.zeros((1, fan_out), dtype=jnp.float32)
        weights.append(w)
        biases.append(b)

    # --- Dispatcher (picks the fused single-kernel path at this small N). ---
    out = jax.block_until_ready(
        gcn_forward(a_norm, nfeat, weights, biases, dropout_p=dropout))
    ref = gcn_reference(a_norm, nfeat, weights, biases)
    assert out.shape == (N, out_channels)
    row_sums = jnp.sum(jnp.exp(out), axis=-1)
    assert bool(jnp.all(jnp.abs(row_sums - 1.0) < 1e-3))
    assert bool(jnp.allclose(out, ref, atol=2e-2, rtol=2e-2))

    # --- Tiled streaming path (XW precompute + 512-tile A aggregation). ---
    N2 = 1024
    k2_graph, k2_feat = jax.random.split(jax.random.PRNGKey(1), 2)
    a2 = build_normalized_adjacency(k2_graph, N2)
    x2 = jax.random.normal(k2_feat, (N2, in_channels), dtype=jnp.float32)
    out2 = jax.block_until_ready(
        gcn_forward_tiled(a2, x2, weights, biases, dropout_p=dropout,
                          tile_m=512, tile_k=512))
    ref2 = gcn_reference(a2, x2, weights, biases)
    assert out2.shape == (N2, out_channels)
    row_sums2 = jnp.sum(jnp.exp(out2), axis=-1)
    assert bool(jnp.all(jnp.abs(row_sums2 - 1.0) < 1e-3))
    assert bool(jnp.allclose(out2, ref2, atol=2e-2, rtol=2e-2))

    print("KERNEL_OK")
</pallas_src>

<mosaic_0001>
module attributes {stable_mosaic.version = 11 : i64} {
  func.func @gcn_fused_kernel(%arg0: memref<32x32xbf16, #tpu.memory_space<vmem>>, %arg1: memref<32x128xbf16, #tpu.memory_space<vmem>>, %arg2: memref<128x128xbf16, #tpu.memory_space<vmem>>, %arg3: memref<128x128xbf16, #tpu.memory_space<vmem>>, %arg4: memref<128x128xbf16, #tpu.memory_space<vmem>>, %arg5: memref<1x128xf32, #tpu.memory_space<vmem>>, %arg6: memref<1x128xf32, #tpu.memory_space<vmem>>, %arg7: memref<1x128xf32, #tpu.memory_space<vmem>>, %arg8: memref<32x128xf32, #tpu.memory_space<vmem>>) attributes {dimension_semantics = [], scalar_prefetch = 0 : i64, scratch_operands = 0 : i64, tpu.core_type = #tpu.core_type<tc>} {
    %c0 = arith.constant 0 : index
    %c0_0 = arith.constant 0 : index
    %0 = vector.load %arg0[%c0, %c0_0] : memref<32x32xbf16, #tpu.memory_space<vmem>>, vector<32x32xbf16>
    %c0_1 = arith.constant 0 : index
    %c0_2 = arith.constant 0 : index
    %1 = vector.load %arg1[%c0_1, %c0_2] : memref<32x128xbf16, #tpu.memory_space<vmem>>, vector<32x128xbf16>
    %c0_3 = arith.constant 0 : index
    %c0_4 = arith.constant 0 : index
    %2 = vector.load %arg2[%c0_3, %c0_4] : memref<128x128xbf16, #tpu.memory_space<vmem>>, vector<128x128xbf16>
    %c0_5 = arith.constant 0 : index
    %c0_6 = arith.constant 0 : index
    %3 = vector.load %arg5[%c0_5, %c0_6] : memref<1x128xf32, #tpu.memory_space<vmem>>, vector<1x128xf32>
    %cst = arith.constant dense<0.000000e+00> : vector<32x128xf32>
    %4 = tpu.matmul %1, %2, %cst {dimension_numbers = #tpu.dot_dimension_numbers<[1], [0], [0], [1], [0, 0, 1, 1], [], []>} : vector<32x128xbf16>, vector<128x128xbf16>, vector<32x128xf32> -> vector<32x128xf32>
    %5 = arith.truncf %4 : vector<32x128xf32> to vector<32x128xbf16>
    %cst_7 = arith.constant dense<0.000000e+00> : vector<32x128xf32>
    %6 = tpu.matmul %0, %5, %cst_7 {dimension_numbers = #tpu.dot_dimension_numbers<[1], [0], [0], [1], [0, 0, 1, 1], [], []>} : vector<32x32xbf16>, vector<32x128xbf16>, vector<32x128xf32> -> vector<32x128xf32>
    %7 = vector.broadcast %3 : vector<1x128xf32> to vector<32x128xf32>
    %8 = arith.addf %6, %7 : vector<32x128xf32>
    %cst_8 = arith.constant 0.000000e+00 : f32
    %9 = vector.broadcast %cst_8 : f32 to vector<32x128xf32>
    %10 = arith.maximumf %8, %9 : vector<32x128xf32>
    %11 = arith.truncf %10 : vector<32x128xf32> to vector<32x128xbf16>
    %c0_9 = arith.constant 0 : index
    %c0_10 = arith.constant 0 : index
    %12 = vector.load %arg3[%c0_9, %c0_10] : memref<128x128xbf16, #tpu.memory_space<vmem>>, vector<128x128xbf16>
    %c0_11 = arith.constant 0 : index
    %c0_12 = arith.constant 0 : index
    %13 = vector.load %arg6[%c0_11, %c0_12] : memref<1x128xf32, #tpu.memory_space<vmem>>, vector<1x128xf32>
    %cst_13 = arith.constant dense<0.000000e+00> : vector<32x128xf32>
    %14 = tpu.matmul %11, %12, %cst_13 {dimension_numbers = #tpu.dot_dimension_numbers<[1], [0], [0], [1], [0, 0, 1, 1], [], []>} : vector<32x128xbf16>, vector<128x128xbf16>, vector<32x128xf32> -> vector<32x128xf32>
    %15 = arith.truncf %14 : vector<32x128xf32> to vector<32x128xbf16>
    %cst_14 = arith.constant dense<0.000000e+00> : vector<32x128xf32>
    %16 = tpu.matmul %0, %15, %cst_14 {dimension_numbers = #tpu.dot_dimension_numbers<[1], [0], [0], [1], [0, 0, 1, 1], [], []>} : vector<32x32xbf16>, vector<32x128xbf16>, vector<32x128xf32> -> vector<32x128xf32>
    %17 = vector.broadcast %13 : vector<1x128xf32> to vector<32x128xf32>
    %18 = arith.addf %16, %17 : vector<32x128xf32>
    %cst_15 = arith.constant 0.000000e+00 : f32
    %19 = vector.broadcast %cst_15 : f32 to vector<32x128xf32>
    %20 = arith.maximumf %18, %19 : vector<32x128xf32>
    %21 = arith.truncf %20 : vector<32x128xf32> to vector<32x128xbf16>
    %c0_16 = arith.constant 0 : index
    %c0_17 = arith.constant 0 : index
    %22 = vector.load %arg4[%c0_16, %c0_17] : memref<128x128xbf16, #tpu.memory_space<vmem>>, vector<128x128xbf16>
    %c0_18 = arith.constant 0 : index
    %c0_19 = arith.constant 0 : index
    %23 = vector.load %arg7[%c0_18, %c0_19] : memref<1x128xf32, #tpu.memory_space<vmem>>, vector<1x128xf32>
    %cst_20 = arith.constant dense<0.000000e+00> : vector<32x128xf32>
    %24 = tpu.matmul %21, %22, %cst_20 {dimension_numbers = #tpu.dot_dimension_numbers<[1], [0], [0], [1], [0, 0, 1, 1], [], []>} : vector<32x128xbf16>, vector<128x128xbf16>, vector<32x128xf32> -> vector<32x128xf32>
    %25 = arith.truncf %24 : vector<32x128xf32> to vector<32x128xbf16>
    %cst_21 = arith.constant dense<0.000000e+00> : vector<32x128xf32>
    %26 = tpu.matmul %0, %25, %cst_21 {dimension_numbers = #tpu.dot_dimension_numbers<[1], [0], [0], [1], [0, 0, 1, 1], [], []>} : vector<32x32xbf16>, vector<32x128xbf16>, vector<32x128xf32> -> vector<32x128xf32>
    %27 = vector.broadcast %23 : vector<1x128xf32> to vector<32x128xf32>
    %28 = arith.addf %26, %27 : vector<32x128xf32>
    %29 = tpu.iota {dimensions = array<i32: 1>} : vector<32x128xi32>
    %c8_i32 = arith.constant 8 : i32
    %30 = vector.broadcast %c8_i32 : i32 to vector<32x128xi32>
    %31 = arith.cmpi slt, %29, %30 : vector<32x128xi32>
    %cst_22 = arith.constant -1.000000e+30 : f32
    %32 = vector.broadcast %cst_22 : f32 to vector<32x128xf32>
    %33 = arith.select %31, %28, %32 : vector<32x128xi1>, vector<32x128xf32>
    %cst_23 = arith.constant dense<0xFF800000> : vector<32xf32>
    %34 = vector.multi_reduction <maximumf>, %33, %cst_23 [1] : vector<32x128xf32> to vector<32xf32>
    %35 = vector.shape_cast %34 : vector<32xf32> to vector<32x1xf32>
    %36 = vector.broadcast %35 : vector<32x1xf32> to vector<32x128xf32>
    %37 = arith.subf %33, %36 : vector<32x128xf32>
    %38 = math.exp %37 : vector<32x128xf32>
    %cst_24 = arith.constant dense<0.000000e+00> : vector<32xf32>
    %39 = vector.multi_reduction <add>, %38, %cst_24 [1] : vector<32x128xf32> to vector<32xf32>
    %40 = vector.shape_cast %39 : vector<32xf32> to vector<32x1xf32>
    %41 = math.log %40 : vector<32x1xf32>
    %42 = vector.broadcast %41 : vector<32x1xf32> to vector<32x128xf32>
    %43 = arith.subf %37, %42 : vector<32x128xf32>
    %c0_25 = arith.constant 0 : index
    %c0_26 = arith.constant 0 : index
    %44 = vector.load %arg8[%c0_25, %c0_26] : memref<32x128xf32, #tpu.memory_space<vmem>>, vector<32x128xf32>
    tpu.vector_store %arg8[%c0_25, %c0_26], %43 {strides = array<i32>} : memref<32x128xf32, #tpu.memory_space<vmem>>, vector<32x128xf32>,
    return
  }
}

</mosaic_0001>

<bundles_post_ra>
// kernel: tpu_custom_call.1
= control target key start
LH: loop header
LB: loop body
LE: loop exit
PB: predicated region body
PF: predicated region fallthrough
CT: control target
= control target key end

     0   :  { %13 = vsyncpa [#allocation3], 0  ;;  %s979_s0 = inlined_call_operand.hbm [shape: bf16[32,32], index: 0, kind: input, shape index: {}]   ;;  %s980_s1 = inlined_call_operand.hbm [shape: bf16[32,128], index: 1, kind: input, shape index: {}]   ;;  %s981_s2 = inlined_call_operand.hbm [shape: bf16[128,128], index: 2, kind: input, shape index: {}]   ;;  %s982_s3 = inlined_call_operand.hbm [shape: bf16[128,128], index: 3, kind: input, shape index: {}]   ;;  %s983_s4 = inlined_call_operand.hbm [shape: bf16[128,128], index: 4, kind: input, shape index: {}]   ;;  %s984_s5 = inlined_call_operand.vmem [shape: f32[1,128], index: 5, kind: input, shape index: {}]   ;;  %s985_s6 = inlined_call_operand.vmem [shape: f32[1,128], index: 6, kind: input, shape index: {}]   ;;  %s986_s7 = inlined_call_operand.vmem [shape: f32[1,128], index: 7, kind: input, shape index: {}]   ;;  %s987_s8 = inlined_call_operand.hbm [shape: f32[32,128], index: 8, kind: output, shape index: {}]  }
   0x1   :  { %14 = vsyncpa [#allocation6], 0 }
   0x2   :  { %15 = vsyncpa [#allocation9], 0 }
   0x3   :  { %16 = vsyncpa [#allocation4], 0  ;;  %s34_s29 = sshll.u32 %s980_s1, 4  ;;  %s881_s30 = smov [#allocation5]   ;;  %s35_s29 = int_to_ptr.hbm [resolvable:$true] %s34_s29 }
   0x4   :  { %s36_s9 = sshll.u32 %s881_s30, 4  ;;  %s60_s12 = sshll.u32 %s982_s3, 4  ;;  %s37_s9 = int_to_ptr.vmem [resolvable:$true] %s36_s9  ;;  %s61_s12 = int_to_ptr.hbm [resolvable:$true] %s60_s12 }
   0x5   :  { %s882_s13 = smov 64   ;;  %s883_s14 = smov 4  }
   0x6   :  { %42 = dma.hbm_to_vmem [thread:$0]  %s35_s29, 256, %s37_s9, [#allocation6], %s882_s13, %s882_s13, %s883_s14  }
   0x7   :  { %s884_s15 = smov [#allocation8]   ;;  %s21_s19 = sshll.u32 %s979_s0, 4  ;;  %s22_s19 = int_to_ptr.hbm [resolvable:$true] %s21_s19 }
   0x8   :  { %s62_s16 = sshll.u32 %s884_s15, 4  ;;  %s47_s21 = sshll.u32 %s981_s2, 4  ;;  %s63_s16 = int_to_ptr.vmem [resolvable:$true] %s62_s16  ;;  %s48_s21 = int_to_ptr.hbm [resolvable:$true] %s47_s21 }
   0x9   :  { %68 = dma.hbm_to_vmem [thread:$0]  %s61_s12, 1024, %s63_s16, [#allocation9], %s882_s13, %s882_s13, %s883_s14  }
   0xa   :  { %s885_s22 = smov [#allocation2]   ;;  %s886_s3 = smov [#allocation7]  }
   0xb   :  { %s23_s23 = sshll.u32 %s885_s22, 4  ;;  %s49_s24 = sshll.u32 %s886_s3, 4  ;;  %s24_s23 = int_to_ptr.vmem [resolvable:$true] %s23_s23  ;;  %s50_s24 = int_to_ptr.vmem [resolvable:$true] %s49_s24 }
   0xc   :  { %29 = dma.hbm_to_vmem [thread:$0]  %s22_s19, 256, %s24_s23, [#allocation3], %s882_s13, %s882_s13, %s883_s14  }
   0xd   :  { %s73_s27 = sshll.u32 %s983_s4, 4  ;;  %s887_s0 = smov [#allocation10]   ;;  %s74_s27 = int_to_ptr.hbm [resolvable:$true] %s73_s27 }
   0xe   :  { %55 = dma.hbm_to_vmem [thread:$0]  %s48_s21, 1024, %s50_s24, [#allocation6], %s882_s13, %s882_s13, %s883_s14  }
   0xf   :  { %s75_s28 = sshll.u32 %s887_s0, 4  ;;  %s76_s28 = int_to_ptr.vmem [resolvable:$true] %s75_s28 }
  0x10   :  { %81 = dma.hbm_to_vmem [thread:$0]  %s74_s27, 1024, %s76_s28, [#allocation9], %s882_s13, %s882_s13, %s883_s14  }
  0x11   :  { %873 = dma.done.wait [#allocation3], 256  }
  0x12   :  { %874 = vsyncadd [#allocation3], 4294967040 }
  0x13   :  { %875 = dma.done.wait [#allocation6], 1280  }
  0x14   :  { %876 = vsyncadd [#allocation6], 4294966016 }
  0x15   :  { %877 = dma.done.wait [#allocation9], 2048  }
  0x16   :  { %878 = vsyncadd [#allocation9], 4294965248  ;;  %v683_v0 = vld [vmem:[#allocation7 + $0x38] sm:$0xff]  ;;  %v682_v1 = vld [vmem:[#allocation7 + $0x30] sm:$0xff]  ;;  %vm228_vm0 = vcmask 261120   ;;  %s539_s12 = sshll.u32 %s987_s8, 4  ;;  %s540_s12 = int_to_ptr.hbm [resolvable:$true] %s539_s12 }
  0x17   :  { %194 = vmatpush.bf16.msra.mxu0 %v683_v0  ;;  %v681_v2 = vld [vmem:[#allocation7 + $0x28] sm:$0xff]  ;;  %v680_v3 = vld [vmem:[#allocation7 + $0x20] sm:$0xff]  ;;  %v679_v4 = vld [vmem:[#allocation7 + $0x18] sm:$0xff]  ;;  %s889_s13 = smov 128   ;;  %s890_s14 = smov 8  }
  0x18   :  { %v678_v5 = vld [vmem:[#allocation7 + $0x10] sm:$0xff]  ;;  %v677_v6 = vld [vmem:[#allocation7 + $0x8] sm:$0xff]  ;;  %v676_v7 = vld [vmem:[#allocation7] sm:$0xff] }
  0x19   :  { %v674_v8 = vld [vmem:[#allocation5] sm:$0xff]  ;;  %v675_v9 = vld [vmem:[#allocation5 + $0x8] sm:$0xff]  ;;  %v689_v16 = vld [vmem:[#allocation8 + $0x28] sm:$0xff] }
  0x1a   :  { %v691_v13 = vld [vmem:[#allocation8 + $0x38] sm:$0xff]  ;;  %v690_v14 = vld [vmem:[#allocation8 + $0x30] sm:$0xff]  ;;  %v688_v18 = vld [vmem:[#allocation8 + $0x20] sm:$0xff] }
  0x1b   :  { %195 = vmatpush.bf16.msra.mxu0 %v682_v1  ;;  %325 = vmatpush.bf16.msra.mxu2 %v691_v13  ;;  %v951_v20 = vld [vmem:[#allocation2] sm:$0xff]  ;;  %v955_v21 = vld [vmem:[#allocation2 + $0x8] sm:$0xff]  ;;  %v687_v22 = vld [vmem:[#allocation8 + $0x18] sm:$0xff] }
  0x1c   :  { %v686_v23 = vld [vmem:[#allocation8 + $0x10] sm:$0xff]  ;;  %v685_v24 = vld [vmem:[#allocation8 + $0x8] sm:$0xff]  ;;  %v684_v25 = vld [vmem:[#allocation8] sm:$0xff] }
  0x1d   :  { %v710_v27 = vld [vmem:[%s984_s5] ss:$0 sm:$0xff]  ;;  %v699_v44 = vld [vmem:[#allocation10 + $0x38] sm:$0xff]  ;;  %v698_v45 = vld [vmem:[#allocation10 + $0x30] sm:$0xff] }
  0x1e   :  { %v697_v47 = vld [vmem:[#allocation10 + $0x28] sm:$0xff]  ;;  %v696_v49 = vld [vmem:[#allocation10 + $0x20] sm:$0xff]  ;;  %v695_v51 = vld [vmem:[#allocation10 + $0x18] sm:$0xff] }
  0x1f   :  { %196 = vmatpush.bf16.msra.mxu0 %v681_v2  ;;  %326 = vmatpush.bf16.msra.mxu2 %v690_v14  ;;  %v694_v52 = vld [vmem:[#allocation10 + $0x10] sm:$0xff]  ;;  %v693_v53 = vld [vmem:[#allocation10 + $0x8] sm:$0xff]  ;;  %v692_v54 = vld [vmem:[#allocation10] sm:$0xff] }
  0x20   :  { %v711_v56 = vld [vmem:[%s985_s6] ss:$0 sm:$0xff] }
  0x21   :  { %v712_v14 = vld [vmem:[%s986_s7] ss:$0 sm:$0xff]  ;;  %s888_s7 = smov [#allocation11]  }
  0x22   :  { %s537_s9 = sshll.u32 %s888_s7, 4  ;;  %s538_s9 = int_to_ptr.vmem [resolvable:$true] %s537_s9 }
  0x23   :  { %197 = vmatpush.bf16.msra.mxu0 %v680_v3  ;;  %327 = vmatpush.bf16.msra.mxu2 %v689_v16 }
  0x27   :  { %198 = vmatpush.bf16.msra.mxu0 %v679_v4  ;;  %328 = vmatpush.bf16.msra.mxu2 %v688_v18 }
  0x2b   :  { %199 = vmatpush.bf16.msra.mxu0 %v678_v5  ;;  %329 = vmatpush.bf16.msra.mxu2 %v687_v22 }
  0x2f   :  { %200 = vmatpush.bf16.msra.mxu0 %v677_v6  ;;  %330 = vmatpush.bf16.msra.mxu2 %v686_v23 }
  0x33   :  { %201 = vmatpush.bf16.msra.mxu0 %v676_v7  ;;  %331 = vmatpush.bf16.msra.mxu2 %v685_v24 }
  0x36   :  { %202 = vmatmul.bf16.vlgmr.msra.gmra.mxu0 %v674_v8 }
  0x37   :  { %332 = vmatpush.bf16.msra.mxu2 %v684_v25 }
  0x46   :  { %207 = vmatmul.bf16.gmra.mxu0 %v675_v9 }
  0xb3   :  { %v203_v10 = vpop.f32.mrf.mxu0 }
  0xbb   :  { %v205_v11 = vpop.f32.mrf.mxu0 }
  0xbc   :  { %v213_v19 = vpack.c.bf16 %v205_v11, %v203_v10 }
  0xc3   :  { %v208_v12 = vpop.f32.mrf.mxu0 }
  0xcb   :  { %v210_v15 = vpop.f32.mrf.mxu0 }
  0xcc   :  { %v214_v17 = vpack.c.bf16 %v210_v15, %v208_v12  ;;  %v482_v12 = vlaneseq }
  0xce   :  { %241 = vmatpush.bf16.msra.mxu1 %v214_v17  ;;  %v483_v13 = vand.u32 127, %v482_v12 }
  0xd0   :  { %vm484_vm1 = vcmp.lt.s32.totalorder %v483_v13, 8 }
  0xd2   :  { %242 = vmatpush.bf16.msra.mxu1 %v213_v19 }
  0xd5   :  { %602 = vmatmul.msk.bf16.vlgmr.msra.gmra.mxu1 %vm228_vm0, %v951_v20 }
  0xd6   :  { %439 = vmatpush.bf16.msrb.mxu1 %v699_v44 }
  0xda   :  { %440 = vmatpush.bf16.msrb.mxu1 %v698_v45 }
  0xde   :  { %441 = vmatpush.bf16.msrb.mxu1 %v697_v47 }
  0xe2   :  { %442 = vmatpush.bf16.msrb.mxu1 %v696_v49 }
  0xe5   :  { %603 = vmatmul.msk.bf16.gmra.mxu1 %vm228_vm0, %v955_v21 }
  0xe6   :  { %443 = vmatpush.bf16.msrb.mxu1 %v695_v51 }
  0xea   :  { %444 = vmatpush.bf16.msrb.mxu1 %v694_v52 }
  0xee   :  { %445 = vmatpush.bf16.msrb.mxu1 %v693_v53 }
  0xf2   :  { %446 = vmatpush.bf16.msrb.mxu1 %v692_v54 }
 0x152   :  { %v244_v26 = vpop.f32.mrf.mxu1 }
 0x153   :  { %v245_v28 = vadd.f32 %v710_v27, %v244_v26 }
 0x155   :  { %v254_v31 = vmax.f32 %v245_v28, 0.0 }
 0x15a   :  { %v246_v29 = vpop.f32.mrf.mxu1 }
 0x15b   :  { %v247_v30 = vadd.f32 %v710_v27, %v246_v29 }
 0x15d   :  { %v255_v32 = vmax.f32 %v247_v30, 0.0 }
 0x15f   :  { %v258_v33 = vpack.c.bf16 %v255_v32, %v254_v31 }
 0x161   :  { %333 = vmatmul.bf16.vlgmr.msra.gmra.mxu2 %v258_v33 }
 0x162   :  { %v249_v34 = vpop.f32.mrf.mxu1 }
 0x163   :  { %v250_v35 = vadd.f32 %v710_v27, %v249_v34 }
 0x165   :  { %v256_v38 = vmax.f32 %v250_v35, 0.0 }
 0x16a   :  { %v251_v36 = vpop.f32.mrf.mxu1 }
 0x16b   :  { %v252_v37 = vadd.f32 %v710_v27, %v251_v36 }
 0x16d   :  { %v257_v39 = vmax.f32 %v252_v37, 0.0 }
 0x16f   :  { %v259_v40 = vpack.c.bf16 %v257_v39, %v256_v38 }
 0x171   :  { %338 = vmatmul.bf16.gmra.mxu2 %v259_v40 }
 0x1e4   :  { %v334_v41 = vpop.f32.mrf.mxu2 }
 0x1ec   :  { %v336_v42 = vpop.f32.mrf.mxu2 }
 0x1ed   :  { %v344_v50 = vpack.c.bf16 %v336_v42, %v334_v41 }
 0x1f4   :  { %v339_v43 = vpop.f32.mrf.mxu2 }
 0x1fc   :  { %v341_v46 = vpop.f32.mrf.mxu2 }
 0x1fd   :  { %v345_v48 = vpack.c.bf16 %v341_v46, %v339_v43 }
 0x1ff   :  { %355 = vmatpush.bf16.msra.mxu3 %v345_v48 }
 0x203   :  { %356 = vmatpush.bf16.msra.mxu3 %v344_v50 }
 0x206   :  { %636 = vmatmul.msk.bf16.vlgmr.msra.gmra.mxu3 %vm228_vm0, %v951_v20 }
 0x216   :  { %637 = vmatmul.msk.bf16.gmra.mxu3 %vm228_vm0, %v955_v21 }
 0x289   :  { %v358_v55 = vpop.f32.mrf.mxu3 }
 0x28a   :  { %v359_v57 = vadd.f32 %v711_v56, %v358_v55 }
 0x28c   :  { %v368_v60 = vmax.f32 %v359_v57, 0.0 }
 0x291   :  { %v360_v58 = vpop.f32.mrf.mxu3 }
 0x292   :  { %v361_v59 = vadd.f32 %v711_v56, %v360_v58 }
 0x294   :  { %v369_v61 = vmax.f32 %v361_v59, 0.0 }
 0x296   :  { %v372_v62 = vpack.c.bf16 %v369_v61, %v368_v60 }
 0x298   :  { %447 = vmatmul.bf16.vlgmr.msrb.gmra.mxu1 %v372_v62 }
 0x299   :  { %v363_v63 = vpop.f32.mrf.mxu3 }
 0x29a   :  { %v364_v0 = vadd.f32 %v711_v56, %v363_v63 }
 0x29c   :  { %v370_v3 = vmax.f32 %v364_v0, 0.0 }
 0x2a1   :  { %v365_v1 = vpop.f32.mrf.mxu3 }
 0x2a2   :  { %v366_v2 = vadd.f32 %v711_v56, %v365_v1 }
 0x2a4   :  { %v371_v4 = vmax.f32 %v366_v2, 0.0 }
 0x2a6   :  { %v373_v5 = vpack.c.bf16 %v371_v4, %v370_v3 }
 0x2a8   :  { %452 = vmatmul.bf16.gmra.mxu1 %v373_v5 }
 0x315   :  { %v448_v6 = vpop.f32.mrf.mxu1 }
 0x31d   :  { %v450_v7 = vpop.f32.mrf.mxu1 }
 0x31e   :  { %v458_v11 = vpack.c.bf16 %v450_v7, %v448_v6 }
 0x325   :  { %v453_v8 = vpop.f32.mrf.mxu1 }
 0x32d   :  { %v455_v9 = vpop.f32.mrf.mxu1 }
 0x32e   :  { %v459_v10 = vpack.c.bf16 %v455_v9, %v453_v8 }
 0x330   :  { %469 = vmatpush.bf16.msrb.mxu3 %v459_v10 }
 0x334   :  { %470 = vmatpush.bf16.msrb.mxu3 %v458_v11 }
 0x337   :  { %670 = vmatmul.msk.bf16.vlgmr.msrb.gmra.mxu3 %vm228_vm0, %v951_v20 }
 0x347   :  { %671 = vmatmul.msk.bf16.gmra.mxu3 %vm228_vm0, %v955_v21 }
 0x3ba   :  { %v472_v15 = vpop.f32.mrf.mxu3 }
 0x3bb   :  { %v473_v16 = vadd.f32 %v712_v14, %v472_v15 }
 0x3bd   :  { %v485_v17 = vsel %vm484_vm1, %v473_v16, -1e+30 }
 0x3be   :  { %489 = vmax.xlane.f32.xlu0 %v485_v17 }
 0x3c2   :  { %v474_v18 = vpop.f32.mrf.mxu3 }
 0x3c3   :  { %v475_v19 = vadd.f32 %v712_v14, %v474_v18 }
 0x3c5   :  { %v486_v22 = vsel %vm484_vm1, %v475_v19, -1e+30 }
 0x3c6   :  { %491 = vmax.xlane.f32.xlu0 %v486_v22 }
 0x3ca   :  { %v477_v23 = vpop.f32.mrf.mxu3 }
 0x3cb   :  { %v478_v20 = vadd.f32 %v712_v14, %v477_v23 }
 0x3cd   :  { %v487_v24 = vsel %vm484_vm1, %v478_v20, -1e+30 }
 0x3ce   :  { %493 = vmax.xlane.f32.xlu1 %v487_v24 }
 0x3d2   :  { %v479_v21 = vpop.f32.mrf.mxu3 }
 0x3d3   :  { %v480_v25 = vadd.f32 %v712_v14, %v479_v21 }
 0x3d5   :  { %v488_v26 = vsel %vm484_vm1, %v480_v25, -1e+30 }
 0x3d6   :  { %495 = vmax.xlane.f32.xlu1 %v488_v26 }
 0x431   :  { %v490_v27 = vpop.xlane.xlu0 %489 }
 0x432   :  { %v497_v28 = vsub.f32 %v485_v17, %v490_v27 }
 0x434   :  { %v501_v29 = vmul.f32 1.442695, %v497_v28 }
 0x436   :  { %713 = vpow2.f32 %v501_v29 }
 0x439   :  { %v492_v30 = vpop.xlane.xlu0 %491 }
 0x43a   :  { %v498_v31 = vsub.f32 %v486_v22, %v492_v30 }
 0x43c   :  { %v714_v32 = vpop.eup %713  ;;  %v503_v33 = vmul.f32 1.442695, %v498_v31 }
 0x43d   :  { %509 = vadd.xlane.f32.xlu2 %v714_v32 }
 0x43e   :  { %715 = vpow2.f32 %v503_v33 }
 0x441   :  { %v494_v34 = vpop.xlane.xlu1 %493 }
 0x442   :  { %v499_v35 = vsub.f32 %v487_v24, %v494_v34 }
 0x444   :  { %v716_v36 = vpop.eup %715  ;;  %v505_v37 = vmul.f32 1.442695, %v499_v35 }
 0x445   :  { %511 = vadd.xlane.f32.xlu2 %v716_v36 }
 0x446   :  { %717 = vpow2.f32 %v505_v37 }
 0x449   :  { %v496_v38 = vpop.xlane.xlu1 %495 }
 0x44a   :  { %v500_v39 = vsub.f32 %v488_v26, %v496_v38 }
 0x44c   :  { %v718_v40 = vpop.eup %717  ;;  %v507_v41 = vmul.f32 1.442695, %v500_v39 }
 0x44d   :  { %513 = vadd.xlane.f32.xlu0 %v718_v40 }
 0x44e   :  { %719 = vpow2.f32 %v507_v41 }
 0x454   :  { %v720_v42 = vpop.eup %719 }
 0x455   :  { %515 = vadd.xlane.f32.xlu1 %v720_v42 }
 0x4b0   :  { %v510_v43 = vpop.xlane.xlu2 %509 }
 0x4b1   :  { %721 = vlog2.f32 %v510_v43 }
 0x4b7   :  { %v722_v44 = vpop.eup %721 }
 0x4b8   :  { %v518_v45 = vmul.f32 0.6931472, %v722_v44  ;;  %v512_v46 = vpop.xlane.xlu2 %511 }
 0x4b9   :  { %723 = vlog2.f32 %v512_v46 }
 0x4ba   :  { %v525_v47 = vsub.f32 %v497_v28, %v518_v45 }
 0x4bc   :  { %529 = vst [vmem:[#allocation11] sm:$0xff] %v525_v47 }
 0x4bf   :  { %v724_v48 = vpop.eup %723 }
 0x4c0   :  { %v520_v49 = vmul.f32 0.6931472, %v724_v48  ;;  %v514_v50 = vpop.xlane.xlu0 %513 }
 0x4c1   :  { %725 = vlog2.f32 %v514_v50 }
 0x4c2   :  { %v526_v51 = vsub.f32 %v498_v31, %v520_v49 }
 0x4c4   :  { %530 = vst [vmem:[#allocation11 + $0x8] sm:$0xff] %v526_v51 }
 0x4c7   :  { %v726_v52 = vpop.eup %725 }
 0x4c8   :  { %v522_v53 = vmul.f32 0.6931472, %v726_v52  ;;  %v516_v54 = vpop.xlane.xlu1 %515 }
 0x4c9   :  { %727 = vlog2.f32 %v516_v54 }
 0x4ca   :  { %v527_v55 = vsub.f32 %v499_v35, %v522_v53 }
 0x4cc   :  { %531 = vst [vmem:[#allocation11 + $0x10] sm:$0xff] %v527_v55 }
 0x4cf   :  { %v728_v56 = vpop.eup %727 }
 0x4d0   :  { %v524_v57 = vmul.f32 0.6931472, %v728_v56 }
 0x4d2   :  { %v528_v58 = vsub.f32 %v500_v39, %v524_v57 }
 0x4d4   :  { %532 = vst [vmem:[#allocation11 + $0x18] sm:$0xff] %v528_v58 }
 0x4d5   :  { %545 = dma.vmem_to_hbm [thread:$0]  %s538_s9, 512, %s540_s12, [#allocation4], %s889_s13, %s889_s13, %s890_s14  }
 0x4d6   :  { %879 = dma.done.wait [#allocation4], 512  }
 0x4d7   :  { %880 = vsyncadd [#allocation4], 4294966784 }
 0x4d8   :  { %550 = vsyncpa [#allocation3], 1 }
 0x4d9   :  { %551 = vsyncpa [#allocation6], 1 }
 0x4da   :  { %552 = vsyncpa [#allocation9], 1 }
 0x4db   :  { %553 = vsyncpa [#allocation4], 1 }

</bundles_post_ra>
